<compile_context>
chip_gen: v7x
topology: tpu7x:2x2x1
jax: 0.10.0
libtpu: 0.0.40
codegen_flags: <defaults>
</compile_context>

<pallas_src>
import functools

import jax
import jax.numpy as jnp
from jax.experimental import pallas as pl
from jax.experimental.pallas import tpu as pltpu

CIN_PAD = 8   # conv1 input channels padded to a full sublane group
PAD = 128     # lane-aligned zero halo width (>= W+1 for any supported W)


# ---------------------------------------------------------------------------
# In-kernel building block
# ---------------------------------------------------------------------------

def _conv3x3(x_cm, w_ref, b_ref, W, mask_l, mask_r, relu):
    """3x3 stride-1 'same' conv + folded-BN bias (+ReLU), [C, M] layout.

    x_cm  : [Cin_pad, M] f32 activation (M = H*W flat spatial, lane axis).
    w_ref : [Cout, 9*Cin_pad] bf16, tap-major (t = (dh+1)*3 + (dw+1)).
    b_ref : [Cout, 1] f32 (BN shift).
    The 9 taps are slices of a zero-padded copy of x; the zero halo covers all
    h-edge (dh != 0) out-of-image reads, only the two w-edge masks are applied.
    Returns [Cout, M] f32.
    """
    Cp, M = x_cm.shape
    zpad = jnp.zeros((Cp, PAD), jnp.float32)
    xp = jnp.concatenate([zpad, x_cm, zpad], axis=1)          # [Cp, M + 2*PAD]

    taps = []
    for dh in (-1, 0, 1):
        for dw in (-1, 0, 1):
            d = dh * W + dw
            t = xp[:, PAD + d:PAD + d + M]                    # [Cp, M]
            if dw == -1:
                t = t * mask_l
            elif dw == 1:
                t = t * mask_r
            taps.append(t)
    im2col = jnp.concatenate(taps, axis=0)                    # [9*Cp, M] f32

    y = jnp.dot(w_ref[...], im2col.astype(jnp.bfloat16),
                preferred_element_type=jnp.float32) + b_ref[...]
    return jnp.maximum(y, 0.0) if relu else y


# ---------------------------------------------------------------------------
# Fused kernel: one grid step = one image
# ---------------------------------------------------------------------------

def _backbone_kernel(x_ref, sel_ref, w1_ref, b1_ref, w2_ref, b2_ref, w3_ref,
                     b3_ref, o_ref, *, H, W):
    HW = H * W
    Ho, Wo = H // 2, W // 2
    Mo = Ho * Wo
    C = w1_ref.shape[0]

    x = x_ref[0]                                              # [CIN_PAD, HW]

    # ---- hoisted w-edge masks (once per resolution per grid step) ----
    col1 = jax.lax.broadcasted_iota(jnp.int32, (1, HW), 1) % W
    ml1 = (col1 > 0).astype(jnp.float32)
    mr1 = (col1 < W - 1).astype(jnp.float32)
    col2 = jax.lax.broadcasted_iota(jnp.int32, (1, Mo), 1) % Wo
    ml2 = (col2 > 0).astype(jnp.float32)
    mr2 = (col2 < Wo - 1).astype(jnp.float32)

    # ---- conv1 -> bn1 -> relu (3x3, stride 1, pad 1) ----
    y1 = _conv3x3(x, w1_ref, b1_ref, W, ml1, mr1, relu=True)  # [C, HW]

    # ---- 2x2 stride-2 max pool ----
    # Window max via lane shifts of a right-zero-padded copy; positions that
    # read the pad / wrap across a row are never selected below (anchors are
    # even (h, w) only) and y1 >= 0 post-ReLU, so max-with-0 is harmless.
    ypad = jnp.concatenate([y1, jnp.zeros((C, PAD), jnp.float32)], axis=1)
    m = y1
    for d in (1, W, W + 1):
        m = jnp.maximum(m, ypad[:, d:d + HW])
    # Compaction: precomputed 0/1 selector (host-built, DMAed once).
    x2 = jnp.dot(m, sel_ref[...], preferred_element_type=jnp.float32)  # [C, Mo]

    # ---- BasicBlock: conv-bn-relu, conv-bn, identity add, relu ----
    y2 = _conv3x3(x2, w2_ref, b2_ref, Wo, ml2, mr2, relu=True)
    y3 = _conv3x3(y2, w3_ref, b3_ref, Wo, ml2, mr2, relu=False)
    z = jnp.maximum(y3 + x2, 0.0)                             # [C, Mo]

    # ---- global average pool (AdaptiveAvgPool2d(1)) ----
    avg = jnp.sum(z, axis=1, keepdims=True) * (1.0 / Mo)      # [C, 1]
    o_ref[...] = avg.reshape(1, C, 1)


# ---------------------------------------------------------------------------
# Host-side wrapper
# ---------------------------------------------------------------------------

def backbone_forward(params, x_nchw):
    """params: output of prepare_params(); x_nchw: [B, Cin, H, W] float32.
    Returns [B, C, 1, 1] like torchvision's 'resnet minus fc'."""
    B, Cin, H, W = x_nchw.shape
    assert H % 2 == 0 and W % 2 == 0 and W + 1 <= PAD and Cin <= CIN_PAD
    C = params["w1"].shape[0]
    HW, Ho, Wo = H * W, H // 2, W // 2
    Mo = Ho * Wo

    # NCHW -> [B, CIN_PAD, H*W] (channels on sublanes, spatial on lanes).
    x = x_nchw.reshape(B, Cin, HW).astype(jnp.float32)
    if Cin < CIN_PAD:
        x = jnp.concatenate(
            [x, jnp.zeros((B, CIN_PAD - Cin, HW), jnp.float32)], axis=1)

    # Pooling compaction selector: sel[p, r] = 1 iff flat position p is the
    # top-left anchor of pooled output r.  Built once here, resident in VMEM.
    r = jnp.arange(Mo)
    src = (r // Wo) * (2 * W) + (r % Wo) * 2
    sel = (jnp.arange(HW)[:, None] == src[None, :]).astype(jnp.float32)

    flops = B * (2 * C * (9 * CIN_PAD) * HW          # conv1
                 + 2 * C * HW * Mo                   # pool compaction matmul
                 + 2 * 2 * C * (9 * C) * Mo          # BasicBlock convs
                 + 8 * C * HW + 6 * C * Mo)          # pool max / masks / misc
    bytes_accessed = (B * CIN_PAD * HW * 4 + HW * Mo * 4
                      + 2 * (params["w1"].size + params["w2"].size
                             + params["w3"].size)
                      + 4 * (params["b1"].size + params["b2"].size
                             + params["b3"].size)
                      + B * C * 4)

    out = pl.pallas_call(
        functools.partial(_backbone_kernel, H=H, W=W),
        out_shape=jax.ShapeDtypeStruct((B, C, 1), jnp.float32),
        grid=(B,),
        in_specs=[
            pl.BlockSpec((1, CIN_PAD, HW), lambda b: (b, 0, 0)),   # image b
            pl.BlockSpec(sel.shape, lambda b: (0, 0)),             # selector
            pl.BlockSpec(params["w1"].shape, lambda b: (0, 0)),
            pl.BlockSpec(params["b1"].shape, lambda b: (0, 0)),
            pl.BlockSpec(params["w2"].shape, lambda b: (0, 0)),
            pl.BlockSpec(params["b2"].shape, lambda b: (0, 0)),
            pl.BlockSpec(params["w3"].shape, lambda b: (0, 0)),
            pl.BlockSpec(params["b3"].shape, lambda b: (0, 0)),
        ],
        out_specs=pl.BlockSpec((1, C, 1), lambda b: (b, 0, 0)),
        compiler_params=pltpu.CompilerParams(
            dimension_semantics=("parallel",)),
        cost_estimate=pl.CostEstimate(
            flops=int(flops), transcendentals=0,
            bytes_accessed=int(bytes_accessed)),
    )(x, sel, params["w1"], params["b1"], params["w2"], params["b2"],
      params["w3"], params["b3"])

    return out.reshape(B, C, 1, 1)


# ---------------------------------------------------------------------------
# Parameter construction (deterministic, synthetic — no checkpoint load)
# ---------------------------------------------------------------------------

def fold_bn(gamma, beta, mean, var, eps=1e-5):
    scale = gamma / jnp.sqrt(var + eps)
    shift = beta - mean * scale
    return scale, shift


def make_params(key, c_in=3, c=8):
    ks = jax.random.split(key, 16)

    def bn(i):
        gamma = 1.0 + 0.05 * jax.random.normal(ks[i], (c,), jnp.float32)
        beta = 0.05 * jax.random.normal(ks[i + 1], (c,), jnp.float32)
        mean = 0.05 * jax.random.normal(ks[i + 2], (c,), jnp.float32)
        var = 1.0 + 0.1 * jnp.abs(jax.random.normal(ks[i + 3], (c,), jnp.float32))
        return fold_bn(gamma, beta, mean, var)

    return {
        "conv1_w": 0.1 * jax.random.normal(ks[0], (c, c_in, 3, 3), jnp.float32),
        "bn1": bn(1),
        "b_conv1_w": 0.1 * jax.random.normal(ks[5], (c, c, 3, 3), jnp.float32),
        "b_bn1": bn(6),
        "b_conv2_w": 0.1 * jax.random.normal(ks[10], (c, c, 3, 3), jnp.float32),
        "b_bn2": bn(11),
    }


def prepare_params(raw):
    """One-time prep (outside the forward path): fold eval-mode BN scale into
    the conv weights, reorder OIHW -> [Cout, 9*Cin_pad] tap-major (matching the
    kernel's (dh, dw) loop / im2col row order), zero-pad Cin to 8, cast to
    bf16 for the MXU; BN shift becomes an f32 [Cout, 1] bias."""
    def fold(w_pt, bn_pair, cin_pad=CIN_PAD):
        scale, shift = bn_pair
        cout, cin = w_pt.shape[0], w_pt.shape[1]
        w = jnp.transpose(w_pt, (0, 2, 3, 1)) * scale[:, None, None, None]
        w = w.reshape(cout, 9, cin)                       # [cout, t, cin]
        if cin < cin_pad:
            w = jnp.concatenate(
                [w, jnp.zeros((cout, 9, cin_pad - cin), w.dtype)], axis=2)
        w = w.reshape(cout, 9 * cin_pad).astype(jnp.bfloat16)
        b = shift.reshape(cout, 1).astype(jnp.float32)
        return w, b

    w1, b1 = fold(raw["conv1_w"], raw["bn1"])
    w2, b2 = fold(raw["b_conv1_w"], raw["b_bn1"])
    w3, b3 = fold(raw["b_conv2_w"], raw["b_bn2"])
    return {"w1": w1, "b1": b1, "w2": w2, "b2": b2, "w3": w3, "b3": b3}


# ---------------------------------------------------------------------------
# main
# ---------------------------------------------------------------------------

if __name__ == "__main__":
    key = jax.random.PRNGKey(0)
    k_x, k_p = jax.random.split(key)

    B, C_IN, H, W = 2, 3, 16, 16
    x = jax.random.normal(k_x, (B, C_IN, H, W), dtype=jnp.float32)
    params = prepare_params(make_params(k_p, c_in=C_IN, c=8))

    fwd = jax.jit(backbone_forward)
    out = jax.block_until_ready(fwd(params, x))

    assert out.shape == (B, 8, 1, 1), out.shape
    assert bool(jnp.all(jnp.isfinite(out)))
    print("KERNEL_OK")
</pallas_src>

<mosaic_0001>
module attributes {stable_mosaic.version = 11 : i64} {
  func.func @_backbone_kernel(%arg0: i32, %arg1: memref<1x8x256xf32, #tpu.memory_space<vmem>>, %arg2: memref<256x64xf32, #tpu.memory_space<vmem>>, %arg3: memref<8x72xbf16, #tpu.memory_space<vmem>>, %arg4: memref<8x1xf32, #tpu.memory_space<vmem>>, %arg5: memref<8x72xbf16, #tpu.memory_space<vmem>>, %arg6: memref<8x1xf32, #tpu.memory_space<vmem>>, %arg7: memref<8x72xbf16, #tpu.memory_space<vmem>>, %arg8: memref<8x1xf32, #tpu.memory_space<vmem>>, %arg9: memref<1x8x1xf32, #tpu.memory_space<vmem>>) attributes {dimension_semantics = [#tpu.dimension_semantics<parallel>], iteration_bounds = array<i64: 2>, scalar_prefetch = 0 : i64, scratch_operands = 0 : i64, tpu.core_type = #tpu.core_type<tc>, window_params = [{transform_indices = @transform_0, window_bounds = array<i64: 1, 8, 256>}, {pipeline_mode = #tpu.pipeline_mode<synchronous>, transform_indices = @transform_1, window_bounds = array<i64: 256, 64>}, {pipeline_mode = #tpu.pipeline_mode<synchronous>, transform_indices = @transform_2, window_bounds = array<i64: 8, 72>}, {pipeline_mode = #tpu.pipeline_mode<synchronous>, transform_indices = @transform_3, window_bounds = array<i64: 8, 1>}, {pipeline_mode = #tpu.pipeline_mode<synchronous>, transform_indices = @transform_4, window_bounds = array<i64: 8, 72>}, {pipeline_mode = #tpu.pipeline_mode<synchronous>, transform_indices = @transform_5, window_bounds = array<i64: 8, 1>}, {pipeline_mode = #tpu.pipeline_mode<synchronous>, transform_indices = @transform_6, window_bounds = array<i64: 8, 72>}, {pipeline_mode = #tpu.pipeline_mode<synchronous>, transform_indices = @transform_7, window_bounds = array<i64: 8, 1>}, {transform_indices = @transform_8, window_bounds = array<i64: 1, 8, 1>}]} {
    %c0 = arith.constant 0 : index
    %c0_0 = arith.constant 0 : index
    %c0_1 = arith.constant 0 : index
    %0 = vector.load %arg1[%c0, %c0_0, %c0_1] : memref<1x8x256xf32, #tpu.memory_space<vmem>>, vector<1x8x256xf32>
    %1 = vector.shape_cast %0 : vector<1x8x256xf32> to vector<8x256xf32>
    %2 = tpu.iota {dimensions = array<i32: 1>} : vector<1x256xi32>
    %c16_i32 = arith.constant 16 : i32
    %c0_i32 = arith.constant 0 : i32
    %3 = arith.cmpi eq, %c16_i32, %c0_i32 : i32
    %c1_i32 = arith.constant 1 : i32
    %4 = arith.select %3, %c1_i32, %c16_i32 : i32
    %5 = vector.broadcast %4 : i32 to vector<1x256xi32>
    %6 = arith.remsi %2, %5 : vector<1x256xi32>
    %c0_i32_2 = arith.constant 0 : i32
    %7 = vector.broadcast %c0_i32_2 : i32 to vector<1x256xi32>
    %8 = arith.cmpi ne, %6, %7 : vector<1x256xi32>
    %c0_i32_3 = arith.constant 0 : i32
    %9 = vector.broadcast %c0_i32_3 : i32 to vector<1x256xi32>
    %10 = arith.cmpi slt, %6, %9 : vector<1x256xi32>
    %c0_i32_4 = arith.constant 0 : i32
    %11 = arith.cmpi slt, %4, %c0_i32_4 : i32
    %12 = vector.broadcast %11 : i1 to vector<1x256xi1>
    %13 = vector.broadcast %12 : vector<1x256xi1> to vector<1x256xi1>
    %14 = arith.xori %10, %13 : vector<1x256xi1>
    %15 = arith.andi %14, %8 : vector<1x256xi1>
    %16 = vector.broadcast %4 : i32 to vector<1x256xi32>
    %17 = arith.addi %6, %16 : vector<1x256xi32>
    %18 = arith.select %15, %17, %6 : vector<1x256xi1>, vector<1x256xi32>
    %c0_i32_5 = arith.constant 0 : i32
    %19 = vector.broadcast %c0_i32_5 : i32 to vector<1x256xi32>
    %20 = arith.cmpi sgt, %18, %19 : vector<1x256xi32>
    %21 = arith.extui %20 : vector<1x256xi1> to vector<1x256xi32>
    %22 = arith.sitofp %21 : vector<1x256xi32> to vector<1x256xf32>
    %c15_i32 = arith.constant 15 : i32
    %23 = vector.broadcast %c15_i32 : i32 to vector<1x256xi32>
    %24 = arith.cmpi slt, %18, %23 : vector<1x256xi32>
    %25 = arith.extui %24 : vector<1x256xi1> to vector<1x256xi32>
    %26 = arith.sitofp %25 : vector<1x256xi32> to vector<1x256xf32>
    %27 = tpu.iota {dimensions = array<i32: 1>} : vector<1x64xi32>
    %c8_i32 = arith.constant 8 : i32
    %c0_i32_6 = arith.constant 0 : i32
    %28 = arith.cmpi eq, %c8_i32, %c0_i32_6 : i32
    %c1_i32_7 = arith.constant 1 : i32
    %29 = arith.select %28, %c1_i32_7, %c8_i32 : i32
    %30 = vector.broadcast %29 : i32 to vector<1x64xi32>
    %31 = arith.remsi %27, %30 : vector<1x64xi32>
    %c0_i32_8 = arith.constant 0 : i32
    %32 = vector.broadcast %c0_i32_8 : i32 to vector<1x64xi32>
    %33 = arith.cmpi ne, %31, %32 : vector<1x64xi32>
    %c0_i32_9 = arith.constant 0 : i32
    %34 = vector.broadcast %c0_i32_9 : i32 to vector<1x64xi32>
    %35 = arith.cmpi slt, %31, %34 : vector<1x64xi32>
    %c0_i32_10 = arith.constant 0 : i32
    %36 = arith.cmpi slt, %29, %c0_i32_10 : i32
    %37 = vector.broadcast %36 : i1 to vector<1x64xi1>
    %38 = vector.broadcast %37 : vector<1x64xi1> to vector<1x64xi1>
    %39 = arith.xori %35, %38 : vector<1x64xi1>
    %40 = arith.andi %39, %33 : vector<1x64xi1>
    %41 = vector.broadcast %29 : i32 to vector<1x64xi32>
    %42 = arith.addi %31, %41 : vector<1x64xi32>
    %43 = arith.select %40, %42, %31 : vector<1x64xi1>, vector<1x64xi32>
    %c0_i32_11 = arith.constant 0 : i32
    %44 = vector.broadcast %c0_i32_11 : i32 to vector<1x64xi32>
    %45 = arith.cmpi sgt, %43, %44 : vector<1x64xi32>
    %46 = arith.extui %45 : vector<1x64xi1> to vector<1x64xi32>
    %47 = arith.sitofp %46 : vector<1x64xi32> to vector<1x64xf32>
    %c7_i32 = arith.constant 7 : i32
    %48 = vector.broadcast %c7_i32 : i32 to vector<1x64xi32>
    %49 = arith.cmpi slt, %43, %48 : vector<1x64xi32>
    %50 = arith.extui %49 : vector<1x64xi1> to vector<1x64xi32>
    %51 = arith.sitofp %50 : vector<1x64xi32> to vector<1x64xf32>
    %cst = arith.constant 0.000000e+00 : f32
    %52 = vector.broadcast %cst : f32 to vector<8x128xf32>
    %53 = tpu.concatenate %52, %1, %52 in 1 : vector<8x128xf32>, vector<8x256xf32>, vector<8x128xf32> -> vector<8x512xf32>
    %54 = vector.extract_strided_slice %53 {offsets = [0, 111], sizes = [8, 256], strides = [1, 1]} : vector<8x512xf32> to vector<8x256xf32>
    %55 = vector.broadcast %22 : vector<1x256xf32> to vector<8x256xf32>
    %56 = arith.mulf %54, %55 : vector<8x256xf32>
    %57 = vector.extract_strided_slice %53 {offsets = [0, 112], sizes = [8, 256], strides = [1, 1]} : vector<8x512xf32> to vector<8x256xf32>
    %58 = vector.extract_strided_slice %53 {offsets = [0, 113], sizes = [8, 256], strides = [1, 1]} : vector<8x512xf32> to vector<8x256xf32>
    %59 = vector.broadcast %26 : vector<1x256xf32> to vector<8x256xf32>
    %60 = arith.mulf %58, %59 : vector<8x256xf32>
    %61 = vector.extract_strided_slice %53 {offsets = [0, 127], sizes = [8, 256], strides = [1, 1]} : vector<8x512xf32> to vector<8x256xf32>
    %62 = vector.broadcast %22 : vector<1x256xf32> to vector<8x256xf32>
    %63 = arith.mulf %61, %62 : vector<8x256xf32>
    %64 = vector.extract_strided_slice %53 {offsets = [0, 128], sizes = [8, 256], strides = [1, 1]} : vector<8x512xf32> to vector<8x256xf32>
    %65 = vector.extract_strided_slice %53 {offsets = [0, 129], sizes = [8, 256], strides = [1, 1]} : vector<8x512xf32> to vector<8x256xf32>
    %66 = vector.broadcast %26 : vector<1x256xf32> to vector<8x256xf32>
    %67 = arith.mulf %65, %66 : vector<8x256xf32>
    %68 = vector.extract_strided_slice %53 {offsets = [0, 143], sizes = [8, 256], strides = [1, 1]} : vector<8x512xf32> to vector<8x256xf32>
    %69 = vector.broadcast %22 : vector<1x256xf32> to vector<8x256xf32>
    %70 = arith.mulf %68, %69 : vector<8x256xf32>
    %71 = vector.extract_strided_slice %53 {offsets = [0, 144], sizes = [8, 256], strides = [1, 1]} : vector<8x512xf32> to vector<8x256xf32>
    %72 = vector.extract_strided_slice %53 {offsets = [0, 145], sizes = [8, 256], strides = [1, 1]} : vector<8x512xf32> to vector<8x256xf32>
    %73 = vector.broadcast %26 : vector<1x256xf32> to vector<8x256xf32>
    %74 = arith.mulf %72, %73 : vector<8x256xf32>
    %75 = tpu.concatenate %56, %57, %60, %63, %64, %67, %70, %71, %74 in 0 : vector<8x256xf32>, vector<8x256xf32>, vector<8x256xf32>, vector<8x256xf32>, vector<8x256xf32>, vector<8x256xf32>, vector<8x256xf32>, vector<8x256xf32>, vector<8x256xf32> -> vector<72x256xf32>
    %c0_12 = arith.constant 0 : index
    %c0_13 = arith.constant 0 : index
    %76 = vector.load %arg3[%c0_12, %c0_13] : memref<8x72xbf16, #tpu.memory_space<vmem>>, vector<8x72xbf16>
    %77 = arith.truncf %75 : vector<72x256xf32> to vector<72x256xbf16>
    %cst_14 = arith.constant dense<0.000000e+00> : vector<8x256xf32>
    %78 = tpu.matmul %76, %77, %cst_14 {dimension_numbers = #tpu.dot_dimension_numbers<[1], [0], [0], [1], [0, 0, 1, 1], [], []>} : vector<8x72xbf16>, vector<72x256xbf16>, vector<8x256xf32> -> vector<8x256xf32>
    %c0_15 = arith.constant 0 : index
    %c0_16 = arith.constant 0 : index
    %79 = vector.load %arg4[%c0_15, %c0_16] : memref<8x1xf32, #tpu.memory_space<vmem>>, vector<8x1xf32>
    %80 = vector.broadcast %79 : vector<8x1xf32> to vector<8x256xf32>
    %81 = arith.addf %78, %80 : vector<8x256xf32>
    %cst_17 = arith.constant 0.000000e+00 : f32
    %82 = vector.broadcast %cst_17 : f32 to vector<8x256xf32>
    %83 = arith.maximumf %81, %82 : vector<8x256xf32>
    %cst_18 = arith.constant 0.000000e+00 : f32
    %84 = vector.broadcast %cst_18 : f32 to vector<8x128xf32>
    %85 = tpu.concatenate %83, %84 in 1 : vector<8x256xf32>, vector<8x128xf32> -> vector<8x384xf32>
    %86 = vector.extract_strided_slice %85 {offsets = [0, 1], sizes = [8, 256], strides = [1, 1]} : vector<8x384xf32> to vector<8x256xf32>
    %87 = arith.maximumf %83, %86 : vector<8x256xf32>
    %88 = vector.extract_strided_slice %85 {offsets = [0, 16], sizes = [8, 256], strides = [1, 1]} : vector<8x384xf32> to vector<8x256xf32>
    %89 = arith.maximumf %87, %88 : vector<8x256xf32>
    %90 = vector.extract_strided_slice %85 {offsets = [0, 17], sizes = [8, 256], strides = [1, 1]} : vector<8x384xf32> to vector<8x256xf32>
    %91 = arith.maximumf %89, %90 : vector<8x256xf32>
    %c0_19 = arith.constant 0 : index
    %c0_20 = arith.constant 0 : index
    %92 = vector.load %arg2[%c0_19, %c0_20] : memref<256x64xf32, #tpu.memory_space<vmem>>, vector<256x64xf32>
    %cst_21 = arith.constant dense<0.000000e+00> : vector<8x64xf32>
    %93 = tpu.matmul %91, %92, %cst_21 {dimension_numbers = #tpu.dot_dimension_numbers<[1], [0], [0], [1], [0, 0, 1, 1], [], []>} : vector<8x256xf32>, vector<256x64xf32>, vector<8x64xf32> -> vector<8x64xf32>
    %cst_22 = arith.constant 0.000000e+00 : f32
    %94 = vector.broadcast %cst_22 : f32 to vector<8x128xf32>
    %95 = tpu.concatenate %94, %93, %94 in 1 : vector<8x128xf32>, vector<8x64xf32>, vector<8x128xf32> -> vector<8x320xf32>
    %96 = vector.extract_strided_slice %95 {offsets = [0, 119], sizes = [8, 64], strides = [1, 1]} : vector<8x320xf32> to vector<8x64xf32>
    %97 = vector.broadcast %47 : vector<1x64xf32> to vector<8x64xf32>
    %98 = arith.mulf %96, %97 : vector<8x64xf32>
    %99 = vector.extract_strided_slice %95 {offsets = [0, 120], sizes = [8, 64], strides = [1, 1]} : vector<8x320xf32> to vector<8x64xf32>
    %100 = vector.extract_strided_slice %95 {offsets = [0, 121], sizes = [8, 64], strides = [1, 1]} : vector<8x320xf32> to vector<8x64xf32>
    %101 = vector.broadcast %51 : vector<1x64xf32> to vector<8x64xf32>
    %102 = arith.mulf %100, %101 : vector<8x64xf32>
    %103 = vector.extract_strided_slice %95 {offsets = [0, 127], sizes = [8, 64], strides = [1, 1]} : vector<8x320xf32> to vector<8x64xf32>
    %104 = vector.broadcast %47 : vector<1x64xf32> to vector<8x64xf32>
    %105 = arith.mulf %103, %104 : vector<8x64xf32>
    %106 = vector.extract_strided_slice %95 {offsets = [0, 128], sizes = [8, 64], strides = [1, 1]} : vector<8x320xf32> to vector<8x64xf32>
    %107 = vector.extract_strided_slice %95 {offsets = [0, 129], sizes = [8, 64], strides = [1, 1]} : vector<8x320xf32> to vector<8x64xf32>
    %108 = vector.broadcast %51 : vector<1x64xf32> to vector<8x64xf32>
    %109 = arith.mulf %107, %108 : vector<8x64xf32>
    %110 = vector.extract_strided_slice %95 {offsets = [0, 135], sizes = [8, 64], strides = [1, 1]} : vector<8x320xf32> to vector<8x64xf32>
    %111 = vector.broadcast %47 : vector<1x64xf32> to vector<8x64xf32>
    %112 = arith.mulf %110, %111 : vector<8x64xf32>
    %113 = vector.extract_strided_slice %95 {offsets = [0, 136], sizes = [8, 64], strides = [1, 1]} : vector<8x320xf32> to vector<8x64xf32>
    %114 = vector.extract_strided_slice %95 {offsets = [0, 137], sizes = [8, 64], strides = [1, 1]} : vector<8x320xf32> to vector<8x64xf32>
    %115 = vector.broadcast %51 : vector<1x64xf32> to vector<8x64xf32>
    %116 = arith.mulf %114, %115 : vector<8x64xf32>
    %117 = tpu.concatenate %98, %99, %102, %105, %106, %109, %112, %113, %116 in 0 : vector<8x64xf32>, vector<8x64xf32>, vector<8x64xf32>, vector<8x64xf32>, vector<8x64xf32>, vector<8x64xf32>, vector<8x64xf32>, vector<8x64xf32>, vector<8x64xf32> -> vector<72x64xf32>
    %c0_23 = arith.constant 0 : index
    %c0_24 = arith.constant 0 : index
    %118 = vector.load %arg5[%c0_23, %c0_24] : memref<8x72xbf16, #tpu.memory_space<vmem>>, vector<8x72xbf16>
    %119 = arith.truncf %117 : vector<72x64xf32> to vector<72x64xbf16>
    %cst_25 = arith.constant dense<0.000000e+00> : vector<8x64xf32>
    %120 = tpu.matmul %118, %119, %cst_25 {dimension_numbers = #tpu.dot_dimension_numbers<[1], [0], [0], [1], [0, 0, 1, 1], [], []>} : vector<8x72xbf16>, vector<72x64xbf16>, vector<8x64xf32> -> vector<8x64xf32>
    %c0_26 = arith.constant 0 : index
    %c0_27 = arith.constant 0 : index
    %121 = vector.load %arg6[%c0_26, %c0_27] : memref<8x1xf32, #tpu.memory_space<vmem>>, vector<8x1xf32>
    %122 = vector.broadcast %121 : vector<8x1xf32> to vector<8x64xf32>
    %123 = arith.addf %120, %122 : vector<8x64xf32>
    %cst_28 = arith.constant 0.000000e+00 : f32
    %124 = vector.broadcast %cst_28 : f32 to vector<8x64xf32>
    %125 = arith.maximumf %123, %124 : vector<8x64xf32>
    %cst_29 = arith.constant 0.000000e+00 : f32
    %126 = vector.broadcast %cst_29 : f32 to vector<8x128xf32>
    %127 = tpu.concatenate %126, %125, %126 in 1 : vector<8x128xf32>, vector<8x64xf32>, vector<8x128xf32> -> vector<8x320xf32>
    %128 = vector.extract_strided_slice %127 {offsets = [0, 119], sizes = [8, 64], strides = [1, 1]} : vector<8x320xf32> to vector<8x64xf32>
    %129 = vector.broadcast %47 : vector<1x64xf32> to vector<8x64xf32>
    %130 = arith.mulf %128, %129 : vector<8x64xf32>
    %131 = vector.extract_strided_slice %127 {offsets = [0, 120], sizes = [8, 64], strides = [1, 1]} : vector<8x320xf32> to vector<8x64xf32>
    %132 = vector.extract_strided_slice %127 {offsets = [0, 121], sizes = [8, 64], strides = [1, 1]} : vector<8x320xf32> to vector<8x64xf32>
    %133 = vector.broadcast %51 : vector<1x64xf32> to vector<8x64xf32>
    %134 = arith.mulf %132, %133 : vector<8x64xf32>
    %135 = vector.extract_strided_slice %127 {offsets = [0, 127], sizes = [8, 64], strides = [1, 1]} : vector<8x320xf32> to vector<8x64xf32>
    %136 = vector.broadcast %47 : vector<1x64xf32> to vector<8x64xf32>
    %137 = arith.mulf %135, %136 : vector<8x64xf32>
    %138 = vector.extract_strided_slice %127 {offsets = [0, 128], sizes = [8, 64], strides = [1, 1]} : vector<8x320xf32> to vector<8x64xf32>
    %139 = vector.extract_strided_slice %127 {offsets = [0, 129], sizes = [8, 64], strides = [1, 1]} : vector<8x320xf32> to vector<8x64xf32>
    %140 = vector.broadcast %51 : vector<1x64xf32> to vector<8x64xf32>
    %141 = arith.mulf %139, %140 : vector<8x64xf32>
    %142 = vector.extract_strided_slice %127 {offsets = [0, 135], sizes = [8, 64], strides = [1, 1]} : vector<8x320xf32> to vector<8x64xf32>
    %143 = vector.broadcast %47 : vector<1x64xf32> to vector<8x64xf32>
    %144 = arith.mulf %142, %143 : vector<8x64xf32>
    %145 = vector.extract_strided_slice %127 {offsets = [0, 136], sizes = [8, 64], strides = [1, 1]} : vector<8x320xf32> to vector<8x64xf32>
    %146 = vector.extract_strided_slice %127 {offsets = [0, 137], sizes = [8, 64], strides = [1, 1]} : vector<8x320xf32> to vector<8x64xf32>
    %147 = vector.broadcast %51 : vector<1x64xf32> to vector<8x64xf32>
    %148 = arith.mulf %146, %147 : vector<8x64xf32>
    %149 = tpu.concatenate %130, %131, %134, %137, %138, %141, %144, %145, %148 in 0 : vector<8x64xf32>, vector<8x64xf32>, vector<8x64xf32>, vector<8x64xf32>, vector<8x64xf32>, vector<8x64xf32>, vector<8x64xf32>, vector<8x64xf32>, vector<8x64xf32> -> vector<72x64xf32>
    %c0_30 = arith.constant 0 : index
    %c0_31 = arith.constant 0 : index
    %150 = vector.load %arg7[%c0_30, %c0_31] : memref<8x72xbf16, #tpu.memory_space<vmem>>, vector<8x72xbf16>
    %151 = arith.truncf %149 : vector<72x64xf32> to vector<72x64xbf16>
    %cst_32 = arith.constant dense<0.000000e+00> : vector<8x64xf32>
    %152 = tpu.matmul %150, %151, %cst_32 {dimension_numbers = #tpu.dot_dimension_numbers<[1], [0], [0], [1], [0, 0, 1, 1], [], []>} : vector<8x72xbf16>, vector<72x64xbf16>, vector<8x64xf32> -> vector<8x64xf32>
    %c0_33 = arith.constant 0 : index
    %c0_34 = arith.constant 0 : index
    %153 = vector.load %arg8[%c0_33, %c0_34] : memref<8x1xf32, #tpu.memory_space<vmem>>, vector<8x1xf32>
    %154 = vector.broadcast %153 : vector<8x1xf32> to vector<8x64xf32>
    %155 = arith.addf %152, %154 : vector<8x64xf32>
    %156 = arith.addf %155, %93 : vector<8x64xf32>
    %cst_35 = arith.constant 0.000000e+00 : f32
    %157 = vector.broadcast %cst_35 : f32 to vector<8x64xf32>
    %158 = arith.maximumf %156, %157 : vector<8x64xf32>
    %cst_36 = arith.constant dense<0.000000e+00> : vector<8xf32>
    %159 = vector.multi_reduction <add>, %158, %cst_36 [1] : vector<8x64xf32> to vector<8xf32>
    %160 = vector.shape_cast %159 : vector<8xf32> to vector<8x1xf32>
    %cst_37 = arith.constant 1.562500e-02 : f32
    %161 = vector.broadcast %cst_37 : f32 to vector<8x1xf32>
    %162 = arith.mulf %160, %161 : vector<8x1xf32>
    %163 = vector.shape_cast %162 : vector<8x1xf32> to vector<1x8x1xf32>
    %c0_38 = arith.constant 0 : index
    %c0_39 = arith.constant 0 : index
    %c0_40 = arith.constant 0 : index
    %164 = vector.load %arg9[%c0_38, %c0_39, %c0_40] : memref<1x8x1xf32, #tpu.memory_space<vmem>>, vector<1x8x1xf32>
    tpu.vector_store %arg9[%c0_38, %c0_39, %c0_40], %163 {strides = array<i32>} : memref<1x8x1xf32, #tpu.memory_space<vmem>>, vector<1x8x1xf32>,
    return
  }
  func.func @transform_0(%arg0: i32) -> (i32, i32, i32) {
    %c0_i32 = arith.constant 0 : i32
    %c0_i32_0 = arith.constant 0 : i32
    %c0_i32_1 = arith.constant 0 : i32
    return %arg0, %c0_i32, %c0_i32_0 : i32, i32, i32
  }
  func.func @transform_1(%arg0: i32) -> (i32, i32) {
    %c0_i32 = arith.constant 0 : i32
    %c0_i32_0 = arith.constant 0 : i32
    %c0_i32_1 = arith.constant 0 : i32
    return %c0_i32, %c0_i32_0 : i32, i32
  }
  func.func @transform_2(%arg0: i32) -> (i32, i32) {
    %c0_i32 = arith.constant 0 : i32
    %c0_i32_0 = arith.constant 0 : i32
    %c0_i32_1 = arith.constant 0 : i32
    return %c0_i32, %c0_i32_0 : i32, i32
  }
  func.func @transform_3(%arg0: i32) -> (i32, i32) {
    %c0_i32 = arith.constant 0 : i32
    %c0_i32_0 = arith.constant 0 : i32
    %c0_i32_1 = arith.constant 0 : i32
    return %c0_i32, %c0_i32_0 : i32, i32
  }
  func.func @transform_4(%arg0: i32) -> (i32, i32) {
    %c0_i32 = arith.constant 0 : i32
    %c0_i32_0 = arith.constant 0 : i32
    %c0_i32_1 = arith.constant 0 : i32
    return %c0_i32, %c0_i32_0 : i32, i32
  }
  func.func @transform_5(%arg0: i32) -> (i32, i32) {
    %c0_i32 = arith.constant 0 : i32
    %c0_i32_0 = arith.constant 0 : i32
    %c0_i32_1 = arith.constant 0 : i32
    return %c0_i32, %c0_i32_0 : i32, i32
  }
  func.func @transform_6(%arg0: i32) -> (i32, i32) {
    %c0_i32 = arith.constant 0 : i32
    %c0_i32_0 = arith.constant 0 : i32
    %c0_i32_1 = arith.constant 0 : i32
    return %c0_i32, %c0_i32_0 : i32, i32
  }
  func.func @transform_7(%arg0: i32) -> (i32, i32) {
    %c0_i32 = arith.constant 0 : i32
    %c0_i32_0 = arith.constant 0 : i32
    %c0_i32_1 = arith.constant 0 : i32
    return %c0_i32, %c0_i32_0 : i32, i32
  }
  func.func @transform_8(%arg0: i32) -> (i32, i32, i32) {
    %c0_i32 = arith.constant 0 : i32
    %c0_i32_0 = arith.constant 0 : i32
    %c0_i32_1 = arith.constant 0 : i32
    return %arg0, %c0_i32, %c0_i32_0 : i32, i32, i32
  }
}

</mosaic_0001>

<bundles_post_ra>
// kernel: backbone_forward.1
= control target key start
LH: loop header
LB: loop body
LE: loop exit
PB: predicated region body
PF: predicated region fallthrough
CT: control target
= control target key end

     0   :  { %s1507_s27 = smov 0   ;;  %s1862_s0 = inlined_call_operand.vmem [shape: f32[2,8,256], index: 0, kind: input, shape index: {}]   ;;  %s1863_s1 = inlined_call_operand.vmem [shape: f32[256,64], index: 1, kind: input, shape index: {}]   ;;  %s1864_s2 = inlined_call_operand.vmem [shape: bf16[8,72], index: 2, kind: input, shape index: {}]   ;;  %s1865_s3 = inlined_call_operand.vmem [shape: f32[8,1], index: 3, kind: input, shape index: {}]   ;;  %s1866_s4 = inlined_call_operand.vmem [shape: bf16[8,72], index: 4, kind: input, shape index: {}]   ;;  %s1867_s5 = inlined_call_operand.vmem [shape: f32[8,1], index: 5, kind: input, shape index: {}]   ;;  %s1868_s6 = inlined_call_operand.vmem [shape: bf16[8,72], index: 6, kind: input, shape index: {}]   ;;  %s1869_s7 = inlined_call_operand.vmem [shape: f32[8,1], index: 7, kind: input, shape index: {}]   ;;  %s1870_s8 = inlined_call_operand.vmem [shape: f32[2,8,1], index: 8, kind: output, shape index: {}]  }
   0x1 LB: > { %s1180_s28 = sadd.s32 4294967295, %s1439_s27   ;;  %p1184_p0 = scmp.ge.s32.totalorder %s1439_s27, 1  ;;  %s1439_s27 = sphi %s1507_s27, %s18_s27  }
   0x2   : > { %p262_p1 = scmp.lt.s32.totalorder %s1439_s27, 3 }
   0x4   : > { %p263_p2 = pnand %p1184_p0, %p262_p1 }
   0x5   : > { %v307_v0 = vlaneseq (!%p263_p2)  ;;  %p295_p3 = scmp.lt.s32.totalorder (!%p263_p2), %s1180_s28, 1  ;;  %v1441_v5 = vmov (!%p263_p2), 0.0   ;;  %s1442_s30 = smov (!%p263_p2), 113   ;;  %vm384_vm4 = vcmask (!%p263_p2), 924672   ;;  %vm396_vm5 = vcmask (!%p263_p2), 1039360  }
   0x6   : > { %266 = sbr.rel (%p263_p2) target bundleno = 2068 (0x814), region = 52  ;;  %s1443_s9 = smov (!%p263_p2), 1   ;;  %vm408_vm6 = vcmask (!%p263_p2), 7168   ;;  %vm420_vm7 = vcmask (!%p263_p2), 121856   ;;  %vm432_vm8 = vcmask (!%p263_p2), 138240   ;;  %vm370_vm9 = vcmask (!%p263_p2), 908288  }
   0x7   : > { %v1515_v1 = vand.u32 (!%p263_p2), 127, %v307_v0  ;;  %s1444_s13 = smov (!%p263_p2), 127   ;;  %s1445_s14 = smov (!%p263_p2), 15   ;;  %vm478_vm10 = vcmask (!%p263_p2), 916480   ;;  %vm463_vm11 = vcmask (!%p263_p2), 1031168   ;;  %vm501_vm12 = vcmask (!%p263_p2), 900096  }
   0x8   : > { %s1446_s15 = smov (!%p263_p2), 17   ;;  %s1447_s16 = smov (!%p263_p2), 111   ;;  %vm516_vm13 = vcmask (!%p263_p2), 785408   ;;  %vm528_vm14 = vcmask (!%p263_p2), 777216   ;;  %vm543_vm15 = vcmask (!%p263_p2), 769024  }
   0x9   : > { %v309_v2 = vadd.s32 (!%p263_p2), 128, %v1515_v1  ;;  %v314_v3 = vand.u32 (!%p263_p2), 15, %v1515_v1  ;;  %s1448_s17 = smov (!%p263_p2), 126   ;;  %s1449_s18 = smov (!%p263_p2), 112  }
   0xa   : > { %s1450_s19 = smov (!%p263_p2), 110   ;;  %s1451_s20 = smov (!%p263_p2), 95  }
   0xb   : > { %v321_v4 = vand.u32 (!%p263_p2), 15, %v309_v2  ;;  %vm340_vm0 = vcmp.lt.s32.totalorder (!%p263_p2), %v314_v3, 15  ;;  %vm334_vm1 = vcmp.gt.s32.totalorder (!%p263_p2), %v314_v3, 0  ;;  %s1452_s21 = smov (!%p263_p2), 96   ;;  %s1453_s22 = smov (!%p263_p2), 94  }
   0xc   : > { %v1190_v6 = vsel (!%p263_p2), %vm340_vm0, 1.0, %v1441_v5  ;;  %v1188_v8 = vsel (!%p263_p2), %vm334_vm1, 1.0, %v1441_v5  ;;  %vm639_vm0 = vcmask (!%p263_p2), 1043456   ;;  %vm635_vm1 = vcmask (!%p263_p2), 588800   ;;  %s1457_s23 = smov (!%p263_p2), 119   ;;  %s1458_s24 = smov (!%p263_p2), 9  }
   0xd   : > { %s1872_s28 = smov (!%p295_p3, %s1180_s28), 1  ;;  %vm341_vm2 = vcmp.lt.s32.totalorder %v321_v4, 15  ;;  %vm335_vm3 = vcmp.gt.s32.totalorder %v321_v4, 0  ;;  %s1460_s25 = smov 118  }
   0xe   : > { %v1191_v7 = vsel %vm341_vm2, 1.0, %v1441_v5  ;;  %v1189_v9 = vsel %vm335_vm3, 1.0, %v1441_v5  ;;  %s1200_s29 = sshll.u32 %s1872_s28, 4 }
   0xf   : > { %v1337_v10 = vpack.i.bf16 %v1191_v7, %v1190_v6  ;;  %v1342_v11 = vpack.i.bf16 %v1189_v9, %v1188_v8  ;;  %s299_s12 = scalar_lea.vmem %s1862_s0, %s1200_s29 }
  0x10   : > { %v1531_v12 = vld [vmem:[%s299_s12] sm:$0xff]  ;;  %v1533_v13 = vld [vmem:[%s299_s12 + $0x8] sm:$0xff] }
  0x11   : > { %1338 = vrot.lane.b32.xlu0 %v1337_v10, %s1442_s30  ;;  %1348 = vrot.lane.b32.xlu1 %v1337_v10, %s1443_s9  ;;  %v1362_v14 = vpack.i.bf16 %v1533_v13, %v1531_v12 }
  0x15   : > { %1343 = vrot.lane.b32.xlu0 %v1342_v11, %s1444_s13  ;;  %1353 = vrot.lane.b32.xlu1 %v1342_v11, %s1445_s14 }
  0x19   : > { %1358 = vrot.lane.b32.xlu0 %v1337_v10, %s1446_s15  ;;  %1368 = vrot.lane.b32.xlu1 %v1342_v11, %s1447_s16 }
  0x1d   : > { %1363 = vrot.lane.b32.xlu0 %v1362_v14, %s1444_s13  ;;  %443 = vrot.lane.b32.xlu1 %v1441_v5, %s1444_s13 }
  0x21   : > { %1373 = vrot.lane.b32.xlu0 %v1362_v14, %s1447_s16 }
  0x83   : > { %v1339_v15 = vpop.permute.xlu0 %1338  ;;  %v1349_v16 = vpop.permute.xlu1 %1348 }
  0x84   : > { %v1341_v17 = vunpack.i.h.bf16 %v1339_v15  ;;  %v1340_v18 = vunpack.i.l.bf16 %v1339_v15  ;;  %v1351_v19 = vunpack.i.h.bf16 %v1349_v16  ;;  %v1350_v26 = vunpack.i.l.bf16 %v1349_v16 }
  0x86   : > { %v389_v20 = vmul.f32 0.0, %v1340_v18  ;;  %v385_v21 = vsel %vm384_vm4, %v1340_v18, %v1341_v17  ;;  %v415_v23 = vmul.f32 0.0, %v1351_v19  ;;  %v391_v28 = vmul.f32 %v1341_v17, %v1533_v13 }
  0x87   : > { %v1344_v22 = vpop.permute.xlu0 %1343  ;;  %v1354_v27 = vpop.permute.xlu1 %1353  ;;  %v390_v30 = vmul.f32 %v385_v21, %v1531_v12  ;;  %v409_v33 = vsel %vm408_vm6, %v1350_v26, %v1351_v19  ;;  %v413_v39 = vmul.f32 %v1350_v26, %v1531_v12  ;;  %vm827_vm4 = vcmask 523264  }
  0x88   : > { %v1346_v24 = vunpack.i.h.bf16 %v1344_v22  ;;  %v1345_v25 = vunpack.i.l.bf16 %v1344_v22  ;;  %457 = vrot.lane.b32.xlu0 %v389_v20, %s1448_s17  ;;  %v1356_v32 = vunpack.i.h.bf16 %v1354_v27  ;;  %v1355_v34 = vunpack.i.l.bf16 %v1354_v27 }
  0x89   : > { %v1377_v36 = vpack.i.bf16 %v391_v28, %v390_v30  ;;  %v414_v41 = vmul.f32 %v409_v33, %v1533_v13 }
  0x8a   : > { %v401_v29 = vmul.f32 0.0, %v1345_v25  ;;  %v397_v31 = vsel %vm396_vm5, %v1345_v25, %v1346_v24  ;;  %v403_v35 = vmul.f32 %v1346_v24, %v1533_v13  ;;  %v427_v40 = vmul.f32 0.0, %v1356_v32 }
  0x8b   : > { %v402_v37 = vmul.f32 %v397_v31, %v1531_v12  ;;  %v1359_v38 = vpop.permute.xlu0 %1358  ;;  %v421_v42 = vsel %vm420_vm7, %v1355_v34, %v1356_v32  ;;  %v1369_v46 = vpop.permute.xlu1 %1368  ;;  %v425_v47 = vmul.f32 %v1355_v34, %v1531_v12  ;;  %v1392_v48 = vpack.i.bf16 %v414_v41, %v413_v39 }
  0x8c   : > { %472 = vrot.lane.b32.xlu1 %v401_v29, %s1449_s18  ;;  %499 = vrot.lane.b32.xlu0 %v415_v23, %s1450_s19  ;;  %v1361_v43 = vunpack.i.h.bf16 %v1359_v38  ;;  %v1360_v44 = vunpack.i.l.bf16 %v1359_v38  ;;  %v426_v49 = vmul.f32 %v421_v42, %v1533_v13  ;;  %v1371_v50 = vunpack.i.h.bf16 %v1369_v46 }
  0x8d   : > { %v1387_v45 = vpack.i.bf16 %v403_v35, %v402_v37  ;;  %v1370_v55 = vunpack.i.l.bf16 %v1369_v46  ;;  %vm879_vm7 = vcmask 982016  }
  0x8e   : > { %v433_v51 = vsel %vm432_vm8, %v1360_v44, %v1361_v43  ;;  %v439_v53 = vmul.f32 0.0, %v1361_v43  ;;  %v437_v54 = vmul.f32 %v1360_v44, %v1531_v12  ;;  %v1397_v56 = vpack.i.bf16 %v426_v49, %v425_v47 }
  0x8f   : > { %v1364_v52 = vpop.permute.xlu0 %1363  ;;  %v438_v57 = vmul.f32 %v433_v51, %v1533_v13  ;;  %v377_v58 = vmul.f32 %v1371_v50, %v1533_v13  ;;  %v1564_v61 = vpop.permute.xlu1 %443  ;;  %v375_v63 = vmul.f32 0.0, %v1370_v55  ;;  %v371_v2 = vsel %vm370_vm9, %v1370_v55, %v1371_v50 }
  0x90   : > { %1383 = vrot.lane.b32.xlu1 %v1362_v14, %s1451_s20  ;;  %1378 = vrot.lane.b32.xlu0 %v1377_v36, %s1448_s17  ;;  %v1366_v59 = vunpack.i.h.bf16 %v1364_v52  ;;  %v1365_v60 = vunpack.i.l.bf16 %v1364_v52  ;;  %v376_v6 = vmul.f32 %v371_v2, %v1531_v12  ;;  %v1454_v55 = vmov 0  }
  0x91   : > { %v1402_v62 = vpack.i.bf16 %v438_v57, %v437_v54  ;;  %678 = vmatprep.mubr.bf16.mxu0 %v1454_v55  ;;  %1407 = vset.pattern.permute.xlu0 %v1454_v55 }
  0x92   : > { %v552_v0 = vpack.c.bf16 %v1366_v59, %v377_v58  ;;  %v449_v3 = vsel %vm396_vm5, %v1564_v61, %v1365_v60  ;;  %v450_v7 = vsel %vm396_vm5, %v1365_v60, %v1366_v59 }
  0x93   : > { %v550_v4 = vpack.c.bf16 %v449_v3, %v375_v63  ;;  %v551_v8 = vpack.c.bf16 %v450_v7, %v376_v6  ;;  %v1374_v9 = vpop.permute.xlu0 %1373  ;;  %v565_v6 = vld [vmem:[%s1865_s3] sm:$0xff] }
  0x94   : > { %1388 = vrot.lane.b32.xlu1 %v1387_v45, %s1449_s18  ;;  %514 = vrot.lane.b32.xlu0 %v427_v40, %s1452_s21  ;;  %v1375_v19 = vunpack.i.l.bf16 %v1374_v9  ;;  %v1376_v40 = vunpack.i.h.bf16 %v1374_v9 }
  0x96   : > { %v488_v52 = vsel %vm370_vm9, %v1375_v19, %v1376_v40 }
  0x98   : > { %1393 = vrot.lane.b32.xlu1 %v1392_v48, %s1450_s19  ;;  %526 = vrot.lane.b32.xlu0 %v1441_v5, %s1451_s20 }
  0x9c   : > { %1398 = vrot.lane.b32.xlu1 %v1397_v56, %s1452_s21  ;;  %541 = vrot.lane.b32.xlu0 %v439_v53, %s1453_s22  ;;  %s1455_s21 = smov 7  }
  0xa0   : > { %1403 = vrot.lane.b32.xlu1 %v1402_v62, %s1453_s22  ;;  %590 = vrot.lane.b32.xlu0 %v552_v0, %s1446_s15  ;;  %s1456_s22 = smov 121  }
  0xa4   : > { %586 = vrot.lane.b32.xlu1 %v550_v4, %s1446_s15 }
  0xa8   : > { %588 = vrot.lane.b32.xlu1 %v551_v8, %s1446_s15 }
  0xfa   : > { %v458_v10 = vpop.permute.xlu0 %457 }
  0xfe   : > { %v473_v11 = vpop.permute.xlu1 %472  ;;  %v500_v13 = vpop.permute.xlu0 %499 }
 0x102   : > { %v1574_v14 = vpop.permute.xlu1 %1383  ;;  %v1379_v15 = vpop.permute.xlu0 %1378 }
 0x103   : > { %v1385_v25 = vunpack.i.l.bf16 %v1574_v14  ;;  %v1381_v27 = vunpack.i.h.bf16 %v1379_v15  ;;  %v1380_v28 = vunpack.i.l.bf16 %v1379_v15  ;;  %v1386_v51 = vunpack.i.h.bf16 %v1574_v14 }
 0x105   : > { %v465_v34 = vsel %vm463_vm11, %v1380_v28, %v1381_v27  ;;  %v464_v41 = vsel %vm463_vm11, %v458_v10, %v1380_v28  ;;  %v529_v60 = vsel %vm528_vm14, %v1385_v25, %v1386_v51  ;;  %v549_v28 = vld [vmem:[%s1864_s2] sm:$0xf] }
 0x106   : > { %v1389_v16 = vpop.permute.xlu1 %1388  ;;  %v515_v17 = vpop.permute.xlu0 %514 }
 0x107   : > { %v1391_v21 = vunpack.i.h.bf16 %v1389_v16  ;;  %v1390_v22 = vunpack.i.l.bf16 %v1389_v16 }
 0x109   : > { %v480_v31 = vsel %vm478_vm10, %v1390_v22, %v1391_v21  ;;  %v479_v38 = vsel %vm478_vm10, %v473_v11, %v1390_v22  ;;  %v555_v43 = vpack.c.bf16 %v1391_v21, %v1381_v27 }
 0x10a   : > { %v1394_v18 = vpop.permute.xlu1 %1393  ;;  %v527_v23 = vpop.permute.xlu0 %526  ;;  %v554_v36 = vpack.c.bf16 %v480_v31, %v465_v34  ;;  %v553_v44 = vpack.c.bf16 %v479_v38, %v464_v41  ;;  %v725_v31 = vld [vmem:[%s1863_s1] sm:$0xff]  ;;  %v743_v34 = vld [vmem:[%s1863_s1 + $0x90] sm:$0xff]  ;;  %v746_v41 = vld [vmem:[%s1863_s1 + $0xa8] sm:$0xff] }
 0x10b   : > { %v1395_v20 = vunpack.i.l.bf16 %v1394_v18  ;;  %v1396_v37 = vunpack.i.h.bf16 %v1394_v18  ;;  %v530_v59 = vsel %vm528_vm14, %v1386_v51, %v527_v23  ;;  %v727_v38 = vld [vmem:[%s1863_s1 + $0x10] sm:$0xff]  ;;  %v732_v51 = vld [vmem:[%s1863_s1 + $0x38] sm:$0xff] }
 0x10d   : > { %v556_v12 = vpack.c.bf16 %v1395_v20, %v1375_v19  ;;  %v503_v46 = vsel %vm501_vm12, %v1396_v37, %v500_v13  ;;  %v502_v47 = vsel %vm501_vm12, %v1395_v20, %v1396_v37 }
 0x10e   : > { %v1399_v24 = vpop.permute.xlu1 %1398  ;;  %v542_v33 = vpop.permute.xlu0 %541  ;;  %v558_v53 = vpack.c.bf16 %v503_v46, %v1376_v40  ;;  %v557_v54 = vpack.c.bf16 %v502_v47, %v488_v52  ;;  %v745_v40 = vld [vmem:[%s1863_s1 + $0xa0] sm:$0xff]  ;;  %v747_v46 = vld [vmem:[%s1863_s1 + $0xb0] sm:$0xff]  ;;  %v748_v47 = vld [vmem:[%s1863_s1 + $0xb8] sm:$0xff] }
 0x10f   : > { %v1400_v26 = vunpack.i.l.bf16 %v1399_v24  ;;  %598 = vrot.lane.b32.xlu1 %v556_v12, %s1446_s15  ;;  %v1401_v45 = vunpack.i.h.bf16 %v1399_v24 }
 0x111   : > { %v559_v29 = vpack.c.bf16 %v1385_v25, %v1400_v26  ;;  %v517_v57 = vsel %vm516_vm13, %v1400_v26, %v1401_v45  ;;  %v518_v58 = vsel %vm516_vm13, %v1401_v45, %v515_v17  ;;  %v730_v45 = vld [vmem:[%s1863_s1 + $0x28] sm:$0xff] }
 0x112   : > { %v1404_v30 = vpop.permute.xlu1 %1403  ;;  %v591_v42 = vpop.permute.xlu0 %590  ;;  %v560_v62 = vpack.c.bf16 %v529_v60, %v517_v57  ;;  %v561_v63 = vpack.c.bf16 %v530_v59, %v518_v58  ;;  %v734_v57 = vld [vmem:[%s1863_s1 + $0x48] sm:$0xff]  ;;  %v751_v59 = vld [vmem:[%s1863_s1 + $0xd0] sm:$0xff]  ;;  %v752_v60 = vld [vmem:[%s1863_s1 + $0xd8] sm:$0xff] }
 0x113   : > { %v1405_v32 = vunpack.i.l.bf16 %v1404_v30  ;;  %604 = vrot.lane.b32.xlu0 %v559_v29, %s1446_s15  ;;  %v1406_v56 = vunpack.i.h.bf16 %v1404_v30  ;;  %v741_v29 = vld [vmem:[%s1863_s1 + $0x80] sm:$0xff]  ;;  %v742_v30 = vld [vmem:[%s1863_s1 + $0x88] sm:$0xff] }
 0x115   : > { %v562_v35 = vpack.c.bf16 %v1405_v32, %v1405_v32  ;;  %v544_v0 = vsel %vm543_vm15, %v1405_v32, %v1406_v56  ;;  %v545_v2 = vsel %vm543_vm15, %v1406_v56, %v542_v33  ;;  %v1276_v32 = vpack.c.bf16 %v742_v30, %v741_v29  ;;  %v726_v33 = vld [vmem:[%s1863_s1 + $0x8] sm:$0xff]  ;;  %v733_v56 = vld [vmem:[%s1863_s1 + $0x40] sm:$0xff] }
 0x116   : > { %v587_v39 = vpop.permute.xlu1 %586  ;;  %v563_v3 = vpack.c.bf16 %v544_v0, %v544_v0  ;;  %v564_v4 = vpack.c.bf16 %v545_v2, %v545_v2  ;;  %v1294_v58 = vpack.c.bf16 %v734_v57, %v733_v56  ;;  %v736_v0 = vld [vmem:[%s1863_s1 + $0x58] sm:$0xff] }
 0x117   : > { %594 = vrot.lane.b32.xlu0 %v554_v36, %s1446_s15  ;;  %610 = vrot.lane.b32.xlu1 %v562_v35, %s1446_s15  ;;  %v744_v35 = vld [vmem:[%s1863_s1 + $0x98] sm:$0xff]  ;;  %v1278_v36 = vpack.c.bf16 %v726_v33, %v725_v31 }
 0x118   : > { %v1280_v37 = vpack.c.bf16 %v744_v35, %v743_v34  ;;  %1277 = vmatprep.subr.bf16.mxu1 %v1276_v32 }
 0x119   : > { %1279 = vmatpush3.bf16.msra.mxu1 %v1278_v36 }
 0x11a   : > { %v589_v48 = vpop.permute.xlu1 %588  ;;  %1281 = vmatprep.subr.bf16.mxu1 %v1280_v37 }
 0x11b   : > { %592 = vrot.lane.b32.xlu0 %v553_v44, %s1446_s15  ;;  %596 = vrot.lane.b32.xlu1 %v555_v43, %s1446_s15  ;;  %v618_v49 = vsel %vm432_vm8, %v589_v48, %v591_v42  ;;  %v617_v50 = vsel %vm432_vm8, %v587_v39, %v589_v48  ;;  %v728_v39 = vld [vmem:[%s1863_s1 + $0x18] sm:$0xff]  ;;  %v1284_v43 = vpack.c.bf16 %v746_v41, %v745_v40  ;;  %v729_v44 = vld [vmem:[%s1863_s1 + $0x20] sm:$0xff] }
 0x11c   : > { %646 = vmatprep.subr.bf16.mxu0 %v618_v49  ;;  %v1282_v42 = vpack.c.bf16 %v728_v39, %v727_v38  ;;  %v1286_v48 = vpack.c.bf16 %v730_v45, %v729_v44  ;;  %v1288_v49 = vpack.c.bf16 %v748_v47, %v747_v46 }
 0x11d   : > { %647 = vmatpush1.bf16.msra.mxu0 %v617_v50  ;;  %v731_v50 = vld [vmem:[%s1863_s1 + $0x30] sm:$0xff] }
 0x11e   : > { %1283 = vmatpush3.bf16.msra.mxu1 %v1282_v42  ;;  %v1290_v52 = vpack.c.bf16 %v732_v51, %v731_v50 }
 0x11f   : > { %602 = vrot.lane.b32.xlu0 %v558_v53, %s1446_s15  ;;  %600 = vrot.lane.b32.xlu1 %v557_v54, %s1446_s15  ;;  %v749_v53 = vld [vmem:[%s1863_s1 + $0xc0] sm:$0xff]  ;;  %v750_v54 = vld [vmem:[%s1863_s1 + $0xc8] sm:$0xff] }
 0x120   : > { %1285 = vmatprep.subr.bf16.mxu1 %v1284_v43  ;;  %v1292_v55 = vpack.c.bf16 %v750_v54, %v749_v53 }
 0x122   : > { %1287 = vmatpush3.bf16.msra.mxu1 %v1286_v48 }
 0x123   : > { %606 = vrot.lane.b32.xlu0 %v560_v62, %s1446_s15  ;;  %608 = vrot.lane.b32.xlu1 %v561_v63, %s1446_s15  ;;  %v1296_v62 = vpack.c.bf16 %v752_v60, %v751_v59  ;;  %v735_v63 = vld [vmem:[%s1863_s1 + $0x50] sm:$0xff] }
 0x124   : > { %1289 = vmatprep.subr.bf16.mxu1 %v1288_v49  ;;  %v1298_v2 = vpack.c.bf16 %v736_v0, %v735_v63 }
 0x126   : > { %1291 = vmatpush3.bf16.msra.mxu1 %v1290_v52 }
 0x127   : > { %612 = vrot.lane.b32.xlu0 %v563_v3, %s1446_s15  ;;  %614 = vrot.lane.b32.xlu1 %v564_v4, %s1446_s15  ;;  %v753_v4 = vld [vmem:[%s1863_s1 + $0xe0] sm:$0xff] }
 0x128   : > { %1293 = vmatprep.subr.bf16.mxu1 %v1292_v55 }
 0x12a   : > { %1295 = vmatpush3.bf16.msra.mxu1 %v1294_v58 }
 0x12b   : > { %568 = vperm.xlu0 %1407, %v565_v6   ;;  %1297 = vmatprep.subr.bf16.mxu1 %v1296_v62  ;;  %v754_v6 = vld [vmem:[%s1863_s1 + $0xe8] sm:$0xff] }
 0x12e   : > { %1299 = vmatpush3.bf16.msra.mxu1 %v1298_v2 }
 0x181   : > { %v599_v7 = vpop.permute.xlu1 %598 }
 0x185   : > { %v605_v8 = vpop.permute.xlu0 %604 }
 0x189   : > { %v595_v9 = vpop.permute.xlu0 %594  ;;  %v611_v10 = vpop.permute.xlu1 %610 }
 0x18d   : > { %v593_v11 = vpop.permute.xlu0 %592  ;;  %v597_v13 = vpop.permute.xlu1 %596 }
 0x18e   : > { %v620_v14 = vsel %vm432_vm8, %v595_v9, %v597_v13  ;;  %v619_v15 = vsel %vm432_vm8, %v593_v11, %v595_v9  ;;  %v738_v9 = vld [vmem:[%s1863_s1 + $0x68] sm:$0xff] }
 0x18f   : > { %648 = vmatprep.subr.bf16.mxu0 %v620_v14 }
 0x190   : > { %649 = vmatpush1.bf16.msra.mxu0 %v619_v15 }
 0x191   : > { %v603_v16 = vpop.permute.xlu0 %602  ;;  %v601_v17 = vpop.permute.xlu1 %600 }
 0x192   : > { %v622_v18 = vsel %vm432_vm8, %v601_v17, %v603_v16  ;;  %v621_v19 = vsel %vm432_vm8, %v599_v7, %v601_v17  ;;  %v1300_v7 = vpack.c.bf16 %v754_v6, %v753_v4  ;;  %v755_v17 = vld [vmem:[%s1863_s1 + $0xf0] sm:$0xff] }
 0x193   : > { %650 = vmatprep.subr.bf16.mxu0 %v622_v18  ;;  %v756_v18 = vld [vmem:[%s1863_s1 + $0xf8] sm:$0xff] }
 0x194   : > { %651 = vmatpush1.bf16.msra.mxu0 %v621_v19  ;;  %1301 = vmatprep.subr.bf16.mxu1 %v1300_v7 }
 0x195   : > { %v607_v20 = vpop.permute.xlu0 %606  ;;  %v609_v12 = vpop.permute.xlu1 %608 }
 0x196   : > { %v624_v21 = vsel %vm432_vm8, %v607_v20, %v609_v12  ;;  %v623_v22 = vsel %vm432_vm8, %v605_v8, %v607_v20  ;;  %v737_v8 = vld [vmem:[%s1863_s1 + $0x60] sm:$0xff]  ;;  %v1304_v12 = vpack.c.bf16 %v756_v18, %v755_v17 }
 0x197   : > { %652 = vmatprep.subr.bf16.mxu0 %v624_v21  ;;  %v1302_v11 = vpack.c.bf16 %v738_v9, %v737_v8  ;;  %v739_v21 = vld [vmem:[%s1863_s1 + $0x70] sm:$0xff] }
 0x198   : > { %653 = vmatpush1.bf16.msra.mxu0 %v623_v22  ;;  %v740_v22 = vld [vmem:[%s1863_s1 + $0x78] sm:$0xff] }
 0x199   : > { %v613_v23 = vpop.permute.xlu0 %612  ;;  %v615_v24 = vpop.permute.xlu1 %614  ;;  %1303 = vmatpush3.bf16.msra.mxu1 %v1302_v11 }
 0x19a   : > { %v625_v25 = vsel %vm432_vm8, %v611_v10, %v613_v23  ;;  %v626_v26 = vsel %vm432_vm8, %v613_v23, %v615_v24  ;;  %v1306_v24 = vpack.c.bf16 %v740_v22, %v739_v21  ;;  %1305 = vmatprep.subr.bf16.mxu1 %v1304_v12  ;;  %vm1461_vm8 = vmmov 0  }
 0x19b   : > { %1194 = vmatprep.subr.msk.bf16.mxu0 %vm639_vm0, %v626_v26  ;;  %v641_v27 = vsel %vm639_vm0, %v625_v25, 0  ;;  %v350_v26 = vand.u32 7, %v1515_v1 }
 0x19c   : > { %655 = vmatpush1.bf16.msra.mxu0 %v641_v27 }
 0x19d   : > { %1248 = vmatprep.subr.bf16.mxu0 %v1441_v5  ;;  %1307 = vmatpush3.bf16.msra.mxu1 %v1306_v24  ;;  %vm358_vm2 = vcmp.gt.s32.totalorder %v350_v26, 0  ;;  %vm361_vm3 = vcmp.lt.s32.totalorder %v350_v26, 7 }
 0x19e   : > { %1262 = vmatprep.subr.bf16.mxu1 %v1441_v5  ;;  %v1193_v29 = vsel %vm361_vm3, 1.0, %v1441_v5 }
 0x19f   : > { %1195 = vmatmul.mubr.msk.bf16.vlgmr.msra.gmra.mrb[0].mxu0 %vm635_vm1, %v549_v28  ;;  %v1192_v28 = vsel %vm358_vm2, 1.0, %v1441_v5 }
 0x1a0   : > { %1258 = vmatprep.mubr.msk.bf16.mxu0 %vm1461_vm8, %v1441_v5 }
 0x1aa   : > { %v569_v3 = vpop.permute.xlu0 %568 }
 0x272   : > { %v680_v10 = vpop.f32.mrb[0].mxu0 }
 0x273   : > { %v681_v13 = vadd.f32 %v680_v10, %v569_v3  ;;  %v682_v14 = vpop.f32.mrb[1].mxu0 }
 0x274   : > { %v683_v15 = vadd.f32 %v682_v14, %v569_v3  ;;  %v684_v16 = vpop.f32.mrb[2].mxu0 }
 0x275   : > { %v687_v19 = vmax.f32 %v681_v13, 0.0  ;;  %v685_v20 = vpop.f32.mrb[3].mxu0 }
 0x276   : > { %v688_v23 = vmax.f32 %v683_v15, 0.0 }
 0x277   : > { %701 = vrot.lane.b32.xlu0 %v687_v19, %s1449_s18 }
 0x278   : > { %v1408_v25 = vpack.i.bf16 %v687_v19, %v688_v23  ;;  %v1413_v27 = vpack.i.bf16 %v1441_v5, %v688_v23 }
 0x27a   : > { %1409 = vrot.lane.b32.xlu1 %v1408_v25, %s1444_s13 }
 0x27b   : > { %713 = vrot.lane.b32.xlu0 %v687_v19, %s1447_s16 }
 0x27e   : > { %1414 = vrot.lane.b32.xlu1 %v1413_v27, %s1449_s18 }
 0x27f   : > { %841 = vrot.lane.b32.xlu0 %v1192_v28, %s1444_s13 }
 0x282   : > { %1419 = vrot.lane.b32.xlu1 %v1413_v27, %s1447_s16 }
 0x283   : > { %850 = vrot.lane.b32.xlu0 %v1192_v28, %s1455_s21 }
 0x286   : > { %836 = vrot.lane.b32.xlu1 %v1193_v29, %s1456_s22 }
 0x287   : > { %830 = vrot.lane.b32.xlu0 %v1192_v28, %s1457_s23 }
 0x28a   : > { %846 = vrot.lane.b32.xlu1 %v1193_v29, %s1443_s9  ;;  %s1459_s9 = smov 120  }
 0x28e   : > { %854 = vrot.lane.b32.xlu1 %v1193_v29, %s1458_s24 }
 0x2e9   : > { %v702_v32 = vpop.permute.xlu0 %701 }
 0x2ec   : > { %v1410_v1 = vpop.permute.xlu1 %1409 }
 0x2ed   : > { %v1412_v30 = vunpack.i.h.bf16 %v1410_v1  ;;  %v1411_v31 = vunpack.i.l.bf16 %v1410_v1  ;;  %v714_v45 = vpop.permute.xlu0 %713 }
 0x2ef   : > { %v695_v34 = vsel %vm396_vm5, %v1412_v30, %v1411_v31  ;;  %v696_v37 = vsel %vm396_vm5, %v1411_v31, %v1564_v61 }
 0x2f0   : > { %v1415_v33 = vpop.permute.xlu1 %1414  ;;  %v699_v40 = vmax.f32 %v687_v19, %v695_v34  ;;  %v700_v42 = vmax.f32 %v688_v23, %v696_v37 }
 0x2f1   : > { %v1417_v35 = vunpack.i.h.bf16 %v1415_v33  ;;  %v1416_v36 = vunpack.i.l.bf16 %v1415_v33  ;;  %v1734_v55 = vpop.permute.xlu0 %841 }
 0x2f2   : > { %v844_v58 = vmul.f32 0.0, %v1734_v55 }
 0x2f3   : > { %v707_v38 = vsel %vm478_vm10, %v702_v32, %v1416_v36  ;;  %v708_v39 = vsel %vm478_vm10, %v1416_v36, %v1417_v35  ;;  %v909_v32 = vld [vmem:[%s1867_s5] sm:$0xff] }
 0x2f4   : > { %v1420_v41 = vpop.permute.xlu1 %1419  ;;  %v712_v46 = vmax.f32 %v700_v42, %v708_v39  ;;  %v711_v47 = vmax.f32 %v699_v40, %v707_v38 }
 0x2f5   : > { %v1422_v43 = vunpack.i.h.bf16 %v1420_v41  ;;  %v1421_v44 = vunpack.i.l.bf16 %v1420_v41  ;;  %v1752_v4 = vpop.permute.xlu0 %850 }
 0x2f7   : > { %v720_v48 = vsel %vm370_vm9, %v1421_v44, %v1422_v43  ;;  %v719_v49 = vsel %vm370_vm9, %v714_v45, %v1421_v44  ;;  %vm936_vm9 = vcmask 72704   ;;  %v901_v44 = vld [vmem:[%s1866_s4] sm:$0xf] }
 0x2f8   : > { %v724_v50 = vmax.f32 %v712_v46, %v720_v48  ;;  %v723_v51 = vmax.f32 %v711_v47, %v719_v49  ;;  %v1732_v54 = vpop.permute.xlu1 %836 }
 0x2f9   : > { %v839_v57 = vmul.f32 0.0, %v1732_v54  ;;  %v1761_v9 = vpop.permute.xlu0 %830 }
 0x2fa   : > { %821 = vmatprep.mubr.f32.mxu1 %v724_v50  ;;  %v1764_v10 = vmul.f32 0.0, %v1761_v9 }
 0x2fb   : > { %822 = vmatmul.mubr.f32.vlgmr.msra.gmra.mrb[0].mxu1 %v723_v51 }
 0x2fc   : > { %v1747_v2 = vpop.permute.xlu1 %846  ;;  %1272 = vmatprep.mubr.msk.bf16.mxu1 %vm1461_vm8, %v1441_v5 }
 0x300   : > { %v1755_v7 = vpop.permute.xlu1 %854 }
 0x3ce   : > { %v1233_v52 = vpop.f32.mrb[0].mxu1 }
 0x3cf   : > { %v1234_v53 = vpop.f32.mrb[1].mxu1 }
 0x3d0   : > { %v1736_v56 = vadd.f32 %v1234_v53, %v1233_v52 }
 0x3d2   : > { %v828_v59 = vsel %vm827_vm4, %v1736_v56, 0.0 }
 0x3d3   : > { %859 = vrot.lane.b32.xlu1 %v828_v59, %s1444_s13  ;;  %v840_v60 = vmul.f32 %v1732_v54, %v828_v59  ;;  %v845_v62 = vmul.f32 %v1734_v55, %v828_v59  ;;  %v849_v3 = vmul.f32 %v1747_v2, %v828_v59  ;;  %v853_v6 = vmul.f32 %v1752_v4, %v828_v59 }
 0x3d4   : > { %v857_v8 = vmul.f32 %v1755_v7, %v828_v59  ;;  %v834_v11 = vmul.f32 %v1761_v9, %v828_v59 }
 0x3d5   : > { %v1423_v63 = vpack.i.bf16 %v840_v60, %v839_v57  ;;  %v1428_v0 = vpack.i.bf16 %v845_v62, %v844_v58 }
 0x3d7   : > { %1424 = vrot.lane.b32.xlu0 %v1423_v63, %s1448_s17  ;;  %1429 = vrot.lane.b32.xlu1 %v1428_v0, %s1459_s9 }
 0x3db   : > { %883 = vrot.lane.b32.xlu0 %v828_v59, %s1457_s23  ;;  %887 = vrot.lane.b32.xlu1 %v849_v3, %s1460_s25 }
 0x3df   : > { %894 = vrot.lane.b32.xlu1 %v828_v59, %s1447_s16  ;;  %891 = vrot.lane.b32.xlu0 %v853_v6, %s1449_s18 }
 0x3e3   : > { %898 = vrot.lane.b32.xlu0 %v857_v8, %s1450_s19 }
 0x445   : > { %v860_v13 = vpop.permute.xlu1 %859 }
 0x446   : > { %v861_v14 = vsel %vm396_vm5, %v1564_v61, %v860_v13  ;;  %v903_v15 = vpack.c.bf16 %v860_v13, %v834_v11 }
 0x447   : > { %v902_v16 = vpack.c.bf16 %v861_v14, %v1764_v10 }
 0x448   : > { %924 = vrot.lane.b32.xlu0 %v903_v15, %s1458_s24 }
 0x449   : > { %v1771_v17 = vpop.permute.xlu1 %1429  ;;  %922 = vrot.lane.b32.xlu1 %v902_v16, %s1458_s24  ;;  %v1774_v18 = vpop.permute.xlu0 %1424 }
 0x44a   : > { %v1432_v19 = vunpack.i.h.bf16 %v1771_v17  ;;  %v1431_v20 = vunpack.i.l.bf16 %v1771_v17  ;;  %v1427_v12 = vunpack.i.h.bf16 %v1774_v18  ;;  %v1426_v21 = vunpack.i.l.bf16 %v1774_v18  ;;  %v1041_v17 = vld [vmem:[%s1869_s7] sm:$0xff] }
 0x44c   : > { %v905_v22 = vpack.c.bf16 %v1432_v19, %v1427_v12  ;;  %v870_v23 = vsel %vm463_vm11, %v1426_v21, %v1427_v12  ;;  %v880_v24 = vsel %vm879_vm7, %v1431_v20, %v1432_v19 }
 0x44d   : > { %v888_v25 = vpop.permute.xlu1 %887  ;;  %v884_v26 = vpop.permute.xlu0 %883  ;;  %v904_v27 = vpack.c.bf16 %v880_v24, %v870_v23 }
 0x44e   : > { %928 = vrot.lane.b32.xlu0 %v905_v22, %s1458_s24  ;;  %v906_v28 = vpack.c.bf16 %v888_v25, %v884_v26 }
 0x44f   : > { %926 = vrot.lane.b32.xlu1 %v904_v27, %s1458_s24  ;;  %v1033_v27 = vld [vmem:[%s1868_s6] sm:$0xf] }
 0x451   : > { %v895_v29 = vpop.permute.xlu1 %894  ;;  %v892_v1 = vpop.permute.xlu0 %891 }
 0x452   : > { %v907_v30 = vpack.c.bf16 %v895_v29, %v892_v1 }
 0x453   : > { %930 = vrot.lane.b32.xlu1 %v906_v28, %s1458_s24 }
 0x454   : > { %932 = vrot.lane.b32.xlu0 %v907_v30, %s1458_s24 }
 0x455   : > { %v899_v31 = vpop.permute.xlu0 %898 }
 0x456   : > { %v908_v33 = vpack.c.bf16 %v899_v31, %v899_v31 }
 0x458   : > { %912 = vperm.xlu0 %1407, %v909_v32   ;;  %934 = vrot.lane.b32.xlu1 %v908_v33, %s1458_s24 }
 0x4ba   : > { %v925_v34 = vpop.permute.xlu0 %924 }
 0x4bb   : > { %v923_v35 = vpop.permute.xlu1 %922 }
 0x4bc   : > { %v937_v36 = vsel %vm936_vm9, %v923_v35, %v925_v34 }
 0x4bd   : > { %1249 = vmatpush3.bf16.msra.mxu0 %v937_v36 }
 0x4be   : > { %1250 = vmatprep.subr.bf16.mxu0 %v1441_v5 }
 0x4c0   : > { %v929_v37 = vpop.permute.xlu0 %928 }
 0x4c1   : > { %v927_v38 = vpop.permute.xlu1 %926 }
 0x4c2   : > { %v938_v39 = vsel %vm936_vm9, %v927_v38, %v929_v37 }
 0x4c3   : > { %1251 = vmatpush3.bf16.msra.mxu0 %v938_v39 }
 0x4c4   : > { %1252 = vmatprep.subr.bf16.mxu0 %v1441_v5 }
 0x4c5   : > { %v931_v40 = vpop.permute.xlu1 %930 }
 0x4c6   : > { %v933_v41 = vpop.permute.xlu0 %932 }
 0x4c7   : > { %1253 = vmatpush3.bf16.msra.mxu0 %v931_v40 }
 0x4c8   : > { %1254 = vmatprep.subr.bf16.mxu0 %v1441_v5 }
 0x4ca   : > { %v935_v42 = vpop.permute.xlu1 %934 }
 0x4cb   : > { %1255 = vmatpush3.bf16.msra.mxu0 %v933_v41  ;;  %v947_v43 = vsel %vm639_vm0, %v935_v42, 0 }
 0x4cc   : > { %1256 = vmatprep.subr.bf16.mxu0 %v1441_v5 }
 0x4cf   : > { %1257 = vmatpush3.bf16.msra.mxu0 %v947_v43 }
 0x4d2   : > { %1259 = vmatmul.mubr.msk.bf16.vlgmr.msra.gmra.mrb[4].mxu0 %vm635_vm1, %v901_v44 }
 0x4d7   : > { %v913_v45 = vpop.permute.xlu0 %912 }
 0x5a5   : > { %v983_v46 = vpop.f32.mrb[4].mxu0 }
 0x5a6   : > { %v984_v47 = vadd.f32 %v983_v46, %v913_v45  ;;  %v1260_v48 = vpop.f32.mrb[5].mxu0 }
 0x5a7   : > { %v986_v49 = vpop.f32.mrb[6].mxu0 }
 0x5a8   : > { %v989_v50 = vmax.f32 %v984_v47, 0.0  ;;  %v1261_v51 = vpop.f32.mrb[7].mxu0 }
 0x5aa   : > { %v990_v52 = vsel %vm827_vm4, %v989_v50, 0.0 }
 0x5ab   : > { %998 = vrot.lane.b32.xlu1 %v990_v52, %s1444_s13  ;;  %v992_v53 = vmul.f32 %v990_v52, %v1732_v54  ;;  %v993_v57 = vmul.f32 %v990_v52, %v1734_v55  ;;  %v994_v58 = vmul.f32 %v990_v52, %v1747_v2  ;;  %v995_v59 = vmul.f32 %v990_v52, %v1752_v4 }
 0x5ac   : > { %v996_v54 = vmul.f32 %v990_v52, %v1755_v7  ;;  %v991_v55 = vmul.f32 %v990_v52, %v1761_v9 }
 0x5ad   : > { %1004 = vrot.lane.b32.xlu0 %v992_v53, %s1448_s17 }
 0x5af   : > { %1010 = vrot.lane.b32.xlu1 %v993_v57, %s1459_s9 }
 0x5b1   : > { %1015 = vrot.lane.b32.xlu0 %v990_v52, %s1457_s23 }
 0x5b3   : > { %1019 = vrot.lane.b32.xlu1 %v994_v58, %s1460_s25 }
 0x5b5   : > { %1023 = vrot.lane.b32.xlu0 %v995_v59, %s1449_s18 }
 0x5b7   : > { %1026 = vrot.lane.b32.xlu1 %v990_v52, %s1447_s16 }
 0x5b9   : > { %1030 = vrot.lane.b32.xlu0 %v996_v54, %s1450_s19  ;;  %s1187_s19 = sshll.u32 %s1872_s28, 3 }
 0x5ba   : > { %s303_s14 = scalar_lea.vmem %s1870_s8, %s1187_s19 }
 0x61d   : > { %v999_v60 = vpop.permute.xlu1 %998 }
 0x61e   : > { %v1000_v62 = vsel %vm396_vm5, %v1564_v61, %v999_v60  ;;  %v1035_v63 = vpack.c.bf16 %v999_v60, %v991_v55 }
 0x61f   : > { %v1034_v0 = vpack.c.bf16 %v1000_v62, %v1764_v10  ;;  %v1005_v2 = vpop.permute.xlu0 %1004 }
 0x620   : > { %1056 = vrot.lane.b32.xlu0 %v1035_v63, %s1458_s24  ;;  %v1006_v4 = vsel %vm463_vm11, %v1426_v21, %v1005_v2 }
 0x621   : > { %1054 = vrot.lane.b32.xlu1 %v1034_v0, %s1458_s24  ;;  %v1011_v3 = vpop.permute.xlu1 %1010 }
 0x622   : > { %v1012_v6 = vsel %vm879_vm7, %v1431_v20, %v1011_v3  ;;  %v1037_v7 = vpack.c.bf16 %v1011_v3, %v1005_v2 }
 0x623   : > { %v1036_v8 = vpack.c.bf16 %v1012_v6, %v1006_v4  ;;  %v1016_v61 = vpop.permute.xlu0 %1015 }
 0x624   : > { %1060 = vrot.lane.b32.xlu0 %v1037_v7, %s1458_s24 }
 0x625   : > { %v1020_v9 = vpop.permute.xlu1 %1019  ;;  %1058 = vrot.lane.b32.xlu1 %v1036_v8, %s1458_s24 }
 0x626   : > { %v1038_v10 = vpack.c.bf16 %v1020_v9, %v1016_v61 }
 0x627   : > { %v1024_v11 = vpop.permute.xlu0 %1023 }
 0x629   : > { %v1027_v13 = vpop.permute.xlu1 %1026  ;;  %1062 = vrot.lane.b32.xlu1 %v1038_v10, %s1458_s24 }
 0x62a   : > { %v1039_v14 = vpack.c.bf16 %v1027_v13, %v1024_v11 }
 0x62b   : > { %v1031_v15 = vpop.permute.xlu0 %1030 }
 0x62c   : > { %v1040_v16 = vpack.c.bf16 %v1031_v15, %v1031_v15  ;;  %1064 = vrot.lane.b32.xlu0 %v1039_v14, %s1458_s24 }
 0x62e   : > { %1066 = vrot.lane.b32.xlu1 %v1040_v16, %s1458_s24 }
 0x630   : > { %1044 = vperm.xlu0 %1407, %v1041_v17  }
 0x692   : > { %v1057_v18 = vpop.permute.xlu0 %1056 }
 0x693   : > { %v1055_v19 = vpop.permute.xlu1 %1054 }
 0x694   : > { %v1068_v20 = vsel %vm936_vm9, %v1055_v19, %v1057_v18 }
 0x695   : > { %1263 = vmatpush3.bf16.msra.mxu1 %v1068_v20 }
 0x696   : > { %v1061_v12 = vpop.permute.xlu0 %1060  ;;  %1264 = vmatprep.subr.bf16.mxu1 %v1441_v5 }
 0x697   : > { %v1059_v21 = vpop.permute.xlu1 %1058 }
 0x698   : > { %v1069_v22 = vsel %vm936_vm9, %v1059_v21, %v1061_v12 }
 0x699   : > { %1265 = vmatpush3.bf16.msra.mxu1 %v1069_v22 }
 0x69a   : > { %1266 = vmatprep.subr.bf16.mxu1 %v1441_v5 }
 0x69b   : > { %v1063_v23 = vpop.permute.xlu1 %1062 }
 0x69d   : > { %1267 = vmatpush3.bf16.msra.mxu1 %v1063_v23 }
 0x69e   : > { %1268 = vmatprep.subr.bf16.mxu1 %v1441_v5  ;;  %v1065_v24 = vpop.permute.xlu0 %1064 }
 0x6a0   : > { %v1067_v25 = vpop.permute.xlu1 %1066 }
 0x6a1   : > { %1269 = vmatpush3.bf16.msra.mxu1 %v1065_v24  ;;  %v1078_v26 = vsel %vm639_vm0, %v1067_v25, 0 }
 0x6a2   : > { %1270 = vmatprep.subr.bf16.mxu1 %v1441_v5 }
 0x6a5   : > { %1271 = vmatpush3.bf16.msra.mxu1 %v1078_v26 }
 0x6a8   : > { %1273 = vmatmul.mubr.msk.bf16.vlgmr.msra.gmra.mrb[4].mxu1 %vm635_vm1, %v1033_v27 }
 0x6af   : > { %v1045_v28 = vpop.permute.xlu0 %1044 }
 0x77b   : > { %v1114_v29 = vpop.f32.mrb[4].mxu1 }
 0x77c   : > { %v1115_v1 = vadd.f32 %v1114_v29, %v1045_v28  ;;  %v1274_v30 = vpop.f32.mrb[5].mxu1 }
 0x77d   : > { %v1117_v31 = vpop.f32.mrb[6].mxu1 }
 0x77e   : > { %v1120_v32 = vadd.f32 %v1736_v56, %v1115_v1  ;;  %v1275_v33 = vpop.f32.mrb[7].mxu1 }
 0x780   : > { %v1121_v34 = vmax.f32 %v1120_v32, 0.0 }
 0x782   : > { %v1122_v5 = vsel %vm827_vm4, %v1121_v34, 0.0 }
 0x783   : > { %1123 = vadd.xlane.f32.xlu1 %v1122_v5 }
 0x810   : > { %v1124_v35 = vpop.xlane.xlu1 %1123 }
 0x811   : > { %v1125_v36 = vmul.f32 0.015625, %v1124_v35 }
 0x813   : > { %1126 = vst.msk [vmem:[%s303_s14] sm:$0xff] %vm408_vm6, %v1125_v36 }
 0x814 PF: > { %s18_s27 = sadd.s32 1, %s1439_s27  }
 0x815   : > { %p15_p4 = scmp.ge.s32.totalorder %s18_s27, 4  }
 0x817   :  { %17 = sbr.rel (!%p15_p4) target bundleno = 1 (0x1), region = 82 }

</bundles_post_ra>
